<compile_context>
chip_gen: v5e
topology: v5e:2x2
jax: 0.10.0
libtpu: 0.0.40
codegen_flags: <defaults>
</compile_context>

<pallas_src>
import jax
import jax.numpy as jnp
from jax.experimental import pallas as pl
from jax.experimental.pallas import tpu as pltpu


# Logical (PyTorch) hidden sizes and their lane-aligned (multiple-of-128) pads.
H1 = 400
H2 = 300
H1P = 512
H2P = 384

# Hard tile ceiling: keeps the f32 intermediates (~7.5 KB/row) comfortably
# inside the scoped-VMEM budget on every generation (v7x has only 64 MiB).
_TB_CEIL = 4096


def _round_up(x, m):
    return (x + m - 1) // m * m


def _vmem_limit_bytes():
    """Scoped-VMEM request: enough for tb<=2048 working sets on v5e (whose
    16 MiB default would spill), with headroom under v7x's 64 MiB physical."""
    try:
        cap = pltpu.get_tpu_info().vmem_capacity_bytes
        return int(min(48 << 20, cap * 3 // 4))
    except Exception:
        return 48 << 20


def _const_spec(shape):
    """BlockSpec for weights/biases: constant index_map (VMEM-resident across
    grid steps) and a single pipeline buffer (no point double-buffering an
    operand that never changes)."""
    try:
        return pl.BlockSpec(shape, lambda i: (0, 0),
                            pipeline_mode=pl.Buffered(1))
    except TypeError:  # fallback if this jax version lacks pipeline_mode
        return pl.BlockSpec(shape, lambda i: (0, 0))


def _critic_kernel(s_ref, a_ref, w1s_ref, w1a_ref, b1_ref,
                   w2_ref, b2_ref, w3_ref, b3_ref, o_ref):
    # Layer 1: split first-layer matmul replaces cat([state, action], 1) @ W1.
    # bf16 MXU operands, f32 accumulation; bias add + ReLU in f32.
    s = s_ref[...].astype(jnp.bfloat16)
    a = a_ref[...].astype(jnp.bfloat16)
    h1 = (jnp.dot(s, w1s_ref[...], preferred_element_type=jnp.float32)
          + jnp.dot(a, w1a_ref[...], preferred_element_type=jnp.float32)
          + b1_ref[...])
    h1 = jnp.maximum(h1, 0.0)

    # Layer 2.
    h2 = jnp.dot(h1.astype(jnp.bfloat16), w2_ref[...],
                 preferred_element_type=jnp.float32) + b2_ref[...]
    h2 = jnp.maximum(h2, 0.0)

    # Layer 3 (output width 1): lane reduction on the VPU/XLU instead of a
    # 1-column MXU matmul.  Padded lanes of h2 and w3 are exactly 0.
    out = jnp.sum(h2 * w3_ref[...], axis=-1, keepdims=True) + b3_ref[0, 0]
    o_ref[...] = out.astype(o_ref.dtype)


def critic_forward(state, action, kparams, *, block_b=2048):
    """Pallas implementation of Critic.forward.

    state:   (B, state_dim) f32
    action:  (B, action_dim) f32
    kparams: output of prepare_critic_params (padded / bf16 kernel weights)
    returns  (B, 1) f32
    """
    B, state_dim = state.shape
    action_dim = action.shape[1]

    # --- Tile shaping -------------------------------------------------------
    # block_b is only an upper bound; actual tb is always a multiple of 16 and
    # the batch is split into balanced tiles (minimizes padding waste).
    block_b = max(16, _round_up(min(int(block_b), _TB_CEIL), 16))
    n_tiles = pl.cdiv(B, block_b)
    # v7x megacore: ensure the "parallel" grid has >= 2 steps when each tile
    # stays reasonably large, so both TensorCores get work.  Harmless (just a
    # smaller tile) on single-TC v5e/v6e.
    if n_tiles == 1 and B >= 512:
        n_tiles = 2
    tb = _round_up(pl.cdiv(B, n_tiles), 16)
    Bp = _round_up(B, tb)
    if Bp != B:
        state = jnp.pad(state, ((0, Bp - B), (0, 0)))
        action = jnp.pad(action, ((0, Bp - B), (0, 0)))

    grid = (Bp // tb,)

    flops = 2 * Bp * (state_dim * H1P + action_dim * H1P + H1P * H2P + H2P)
    bytes_accessed = (
        Bp * (state_dim + action_dim) * 4          # activations in (f32)
        + (state_dim + action_dim) * H1P * 2       # fc1 weights (bf16)
        + H1P * H2P * 2                            # fc2 weights (bf16)
        + (H1P + 2 * H2P + 1) * 4                  # biases + fc3 row (f32)
        + Bp * 4                                   # output (f32)
    )

    out = pl.pallas_call(
        _critic_kernel,
        out_shape=jax.ShapeDtypeStruct((Bp, 1), jnp.float32),
        grid=grid,
        in_specs=[
            pl.BlockSpec((tb, state_dim), lambda i: (i, 0)),
            pl.BlockSpec((tb, action_dim), lambda i: (i, 0)),
            _const_spec((state_dim, H1P)),
            _const_spec((action_dim, H1P)),
            _const_spec((1, H1P)),
            _const_spec((H1P, H2P)),
            _const_spec((1, H2P)),
            _const_spec((1, H2P)),
            pl.BlockSpec(memory_space=pltpu.MemorySpace.SMEM),   # b3 scalar
        ],
        out_specs=pl.BlockSpec((tb, 1), lambda i: (i, 0)),
        compiler_params=pltpu.CompilerParams(
            dimension_semantics=("parallel",),
            vmem_limit_bytes=_vmem_limit_bytes()),
        cost_estimate=pl.CostEstimate(
            flops=flops, bytes_accessed=bytes_accessed, transcendentals=0),
    )(state, action,
      kparams["w1s"], kparams["w1a"], kparams["b1"],
      kparams["w2"], kparams["b2"], kparams["w3"], kparams["b3"])

    return out[:B]


def init_critic_params(key, state_dim, action_dim):
    """Logical f32 params mimicking PyTorch nn.Linear default init
    (U(-k, k), k = 1/sqrt(fan_in)); weights stored as (in, out)."""
    d_in = state_dim + action_dim
    ks = jax.random.split(key, 6)

    def lin(kw, kb, fan_in, fan_out):
        bound = 1.0 / jnp.sqrt(jnp.float32(fan_in))
        w = jax.random.uniform(kw, (fan_in, fan_out), jnp.float32, -bound, bound)
        b = jax.random.uniform(kb, (1, fan_out), jnp.float32, -bound, bound)
        return w, b

    w1, b1 = lin(ks[0], ks[1], d_in, H1)
    w2, b2 = lin(ks[2], ks[3], H1, H2)
    w3, b3 = lin(ks[4], ks[5], H2, 1)
    return {"w1": w1, "b1": b1, "w2": w2, "b2": b2, "w3": w3, "b3": b3}


def prepare_critic_params(params, state_dim):
    """One-time (outside the hot path) padding / splitting / bf16 cast of the
    logical params into the layout the kernel consumes."""
    def pad2(x, rows, cols):
        return jnp.pad(x, ((0, rows - x.shape[0]), (0, cols - x.shape[1])))

    w1, b1 = params["w1"], params["b1"]
    w2, b2 = params["w2"], params["b2"]
    w3, b3 = params["w3"], params["b3"]
    action_dim = w1.shape[0] - state_dim

    return {
        # fc1 split into state / action halves (removes the concat).
        "w1s": pad2(w1[:state_dim], state_dim, H1P).astype(jnp.bfloat16),
        "w1a": pad2(w1[state_dim:], action_dim, H1P).astype(jnp.bfloat16),
        "b1": pad2(b1.reshape(1, -1), 1, H1P),                  # f32, 0-padded
        "w2": pad2(w2, H1P, H2P).astype(jnp.bfloat16),
        "b2": pad2(b2.reshape(1, -1), 1, H2P),                  # f32, 0-padded
        "w3": pad2(w3.reshape(1, -1), 1, H2P),                  # f32 row vector
        "b3": b3.reshape(1, 1),                                 # f32 SMEM scalar
    }


def critic_forward_ref(state, action, params):
    """Pure-JAX f32 reference matching the PyTorch module."""
    x = jnp.concatenate([state, action], axis=1)
    h1 = jnp.maximum(x @ params["w1"] + params["b1"], 0.0)
    h2 = jnp.maximum(h1 @ params["w2"] + params["b2"], 0.0)
    return h2 @ params["w3"] + params["b3"]


if __name__ == "__main__":
    key = jax.random.PRNGKey(0)
    k_param, k_state, k_action = jax.random.split(key, 3)

    state_dim, action_dim = 16, 8
    params = init_critic_params(k_param, state_dim, action_dim)
    kparams = prepare_critic_params(params, state_dim)

    # Small single-tile case (grid = (1,)).
    batch = 2
    state = jax.random.normal(k_state, (batch, state_dim), jnp.float32)
    action = jax.random.normal(k_action, (batch, action_dim), jnp.float32)

    out = jax.block_until_ready(critic_forward(state, action, kparams))
    ref = critic_forward_ref(state, action, params)
    assert out.shape == (batch, 1), out.shape
    # bf16 MXU operands with f32 accumulation -> loose-ish tolerance vs f32 ref.
    assert jnp.allclose(out, ref, atol=2e-2, rtol=2e-2), (out, ref)

    # Multi-tile case exercising the grid / batch padding path (grid = (3,)).
    batch2 = 48
    k_s2, k_a2 = jax.random.split(k_state)
    state2 = jax.random.normal(k_s2, (batch2, state_dim), jnp.float32)
    action2 = jax.random.normal(k_a2, (batch2, action_dim), jnp.float32)
    out2 = jax.block_until_ready(
        critic_forward(state2, action2, kparams, block_b=16))
    ref2 = critic_forward_ref(state2, action2, params)
    assert out2.shape == (batch2, 1), out2.shape
    assert jnp.allclose(out2, ref2, atol=2e-2, rtol=2e-2), (out2, ref2)

    print("KERNEL_OK")
</pallas_src>

<mosaic_0001>
module attributes {stable_mosaic.version = 11 : i64} {
  func.func @_critic_kernel(%arg0: i32, %arg1: memref<16x16xf32, #tpu.memory_space<vmem>>, %arg2: memref<16x8xf32, #tpu.memory_space<vmem>>, %arg3: memref<16x512xbf16, #tpu.memory_space<vmem>>, %arg4: memref<8x512xbf16, #tpu.memory_space<vmem>>, %arg5: memref<1x512xf32, #tpu.memory_space<vmem>>, %arg6: memref<512x384xbf16, #tpu.memory_space<vmem>>, %arg7: memref<1x384xf32, #tpu.memory_space<vmem>>, %arg8: memref<1x384xf32, #tpu.memory_space<vmem>>, %arg9: memref<1x1xf32, #tpu.memory_space<smem>>, %arg10: memref<16x1xf32, #tpu.memory_space<vmem>>) attributes {dimension_semantics = [#tpu.dimension_semantics<parallel>], iteration_bounds = array<i64: 1>, scalar_prefetch = 0 : i64, scratch_operands = 0 : i64, tpu.core_type = #tpu.core_type<tc>, window_params = [{transform_indices = @transform_0, window_bounds = array<i64: 16, 16>}, {transform_indices = @transform_1, window_bounds = array<i64: 16, 8>}, {pipeline_mode = #tpu.pipeline_mode<synchronous>, transform_indices = @transform_2, window_bounds = array<i64: 16, 512>}, {pipeline_mode = #tpu.pipeline_mode<synchronous>, transform_indices = @transform_3, window_bounds = array<i64: 8, 512>}, {pipeline_mode = #tpu.pipeline_mode<synchronous>, transform_indices = @transform_4, window_bounds = array<i64: 1, 512>}, {pipeline_mode = #tpu.pipeline_mode<synchronous>, transform_indices = @transform_5, window_bounds = array<i64: 512, 384>}, {pipeline_mode = #tpu.pipeline_mode<synchronous>, transform_indices = @transform_6, window_bounds = array<i64: 1, 384>}, {pipeline_mode = #tpu.pipeline_mode<synchronous>, transform_indices = @transform_7, window_bounds = array<i64: 1, 384>}, {transform_indices = @transform_8, window_bounds = array<i64: 1, 1>}, {transform_indices = @transform_9, window_bounds = array<i64: 16, 1>}]} {
    %c0 = arith.constant 0 : index
    %c0_0 = arith.constant 0 : index
    %0 = vector.load %arg1[%c0, %c0_0] : memref<16x16xf32, #tpu.memory_space<vmem>>, vector<16x16xf32>
    %1 = arith.truncf %0 : vector<16x16xf32> to vector<16x16xbf16>
    %c0_1 = arith.constant 0 : index
    %c0_2 = arith.constant 0 : index
    %2 = vector.load %arg2[%c0_1, %c0_2] : memref<16x8xf32, #tpu.memory_space<vmem>>, vector<16x8xf32>
    %3 = arith.truncf %2 : vector<16x8xf32> to vector<16x8xbf16>
    %c0_3 = arith.constant 0 : index
    %c0_4 = arith.constant 0 : index
    %4 = vector.load %arg3[%c0_3, %c0_4] : memref<16x512xbf16, #tpu.memory_space<vmem>>, vector<16x512xbf16>
    %cst = arith.constant dense<0.000000e+00> : vector<16x512xf32>
    %5 = tpu.matmul %1, %4, %cst {dimension_numbers = #tpu.dot_dimension_numbers<[1], [0], [0], [1], [0, 0, 1, 1], [], []>} : vector<16x16xbf16>, vector<16x512xbf16>, vector<16x512xf32> -> vector<16x512xf32>
    %c0_5 = arith.constant 0 : index
    %c0_6 = arith.constant 0 : index
    %6 = vector.load %arg4[%c0_5, %c0_6] : memref<8x512xbf16, #tpu.memory_space<vmem>>, vector<8x512xbf16>
    %cst_7 = arith.constant dense<0.000000e+00> : vector<16x512xf32>
    %7 = tpu.matmul %3, %6, %cst_7 {dimension_numbers = #tpu.dot_dimension_numbers<[1], [0], [0], [1], [0, 0, 1, 1], [], []>} : vector<16x8xbf16>, vector<8x512xbf16>, vector<16x512xf32> -> vector<16x512xf32>
    %8 = arith.addf %5, %7 : vector<16x512xf32>
    %c0_8 = arith.constant 0 : index
    %c0_9 = arith.constant 0 : index
    %9 = vector.load %arg5[%c0_8, %c0_9] : memref<1x512xf32, #tpu.memory_space<vmem>>, vector<1x512xf32>
    %10 = vector.broadcast %9 : vector<1x512xf32> to vector<16x512xf32>
    %11 = arith.addf %8, %10 : vector<16x512xf32>
    %cst_10 = arith.constant 0.000000e+00 : f32
    %12 = vector.broadcast %cst_10 : f32 to vector<16x512xf32>
    %13 = arith.maximumf %11, %12 : vector<16x512xf32>
    %14 = arith.truncf %13 : vector<16x512xf32> to vector<16x512xbf16>
    %c0_11 = arith.constant 0 : index
    %c0_12 = arith.constant 0 : index
    %15 = vector.load %arg6[%c0_11, %c0_12] : memref<512x384xbf16, #tpu.memory_space<vmem>>, vector<512x384xbf16>
    %cst_13 = arith.constant dense<0.000000e+00> : vector<16x384xf32>
    %16 = tpu.matmul %14, %15, %cst_13 {dimension_numbers = #tpu.dot_dimension_numbers<[1], [0], [0], [1], [0, 0, 1, 1], [], []>} : vector<16x512xbf16>, vector<512x384xbf16>, vector<16x384xf32> -> vector<16x384xf32>
    %c0_14 = arith.constant 0 : index
    %c0_15 = arith.constant 0 : index
    %17 = vector.load %arg7[%c0_14, %c0_15] : memref<1x384xf32, #tpu.memory_space<vmem>>, vector<1x384xf32>
    %18 = vector.broadcast %17 : vector<1x384xf32> to vector<16x384xf32>
    %19 = arith.addf %16, %18 : vector<16x384xf32>
    %cst_16 = arith.constant 0.000000e+00 : f32
    %20 = vector.broadcast %cst_16 : f32 to vector<16x384xf32>
    %21 = arith.maximumf %19, %20 : vector<16x384xf32>
    %c0_17 = arith.constant 0 : index
    %c0_18 = arith.constant 0 : index
    %22 = vector.load %arg8[%c0_17, %c0_18] : memref<1x384xf32, #tpu.memory_space<vmem>>, vector<1x384xf32>
    %23 = vector.broadcast %22 : vector<1x384xf32> to vector<16x384xf32>
    %24 = arith.mulf %21, %23 : vector<16x384xf32>
    %cst_19 = arith.constant dense<0.000000e+00> : vector<16xf32>
    %25 = vector.multi_reduction <add>, %24, %cst_19 [1] : vector<16x384xf32> to vector<16xf32>
    %26 = vector.shape_cast %25 : vector<16xf32> to vector<16x1xf32>
    %c0_20 = arith.constant 0 : index
    %c0_21 = arith.constant 0 : index
    %27 = memref.load %arg9[%c0_20, %c0_21] : memref<1x1xf32, #tpu.memory_space<smem>>
    %28 = vector.broadcast %27 : f32 to vector<16x1xf32>
    %29 = arith.addf %26, %28 : vector<16x1xf32>
    %c0_22 = arith.constant 0 : index
    %c0_23 = arith.constant 0 : index
    %30 = vector.load %arg10[%c0_22, %c0_23] : memref<16x1xf32, #tpu.memory_space<vmem>>, vector<16x1xf32>
    tpu.vector_store %arg10[%c0_22, %c0_23], %29 {strides = array<i32>} : memref<16x1xf32, #tpu.memory_space<vmem>>, vector<16x1xf32>,
    return
  }
  func.func @transform_0(%arg0: i32) -> (i32, i32) {
    %c0_i32 = arith.constant 0 : i32
    %c0_i32_0 = arith.constant 0 : i32
    return %arg0, %c0_i32 : i32, i32
  }
  func.func @transform_1(%arg0: i32) -> (i32, i32) {
    %c0_i32 = arith.constant 0 : i32
    %c0_i32_0 = arith.constant 0 : i32
    return %arg0, %c0_i32 : i32, i32
  }
  func.func @transform_2(%arg0: i32) -> (i32, i32) {
    %c0_i32 = arith.constant 0 : i32
    %c0_i32_0 = arith.constant 0 : i32
    %c0_i32_1 = arith.constant 0 : i32
    return %c0_i32, %c0_i32_0 : i32, i32
  }
  func.func @transform_3(%arg0: i32) -> (i32, i32) {
    %c0_i32 = arith.constant 0 : i32
    %c0_i32_0 = arith.constant 0 : i32
    %c0_i32_1 = arith.constant 0 : i32
    return %c0_i32, %c0_i32_0 : i32, i32
  }
  func.func @transform_4(%arg0: i32) -> (i32, i32) {
    %c0_i32 = arith.constant 0 : i32
    %c0_i32_0 = arith.constant 0 : i32
    %c0_i32_1 = arith.constant 0 : i32
    return %c0_i32, %c0_i32_0 : i32, i32
  }
  func.func @transform_5(%arg0: i32) -> (i32, i32) {
    %c0_i32 = arith.constant 0 : i32
    %c0_i32_0 = arith.constant 0 : i32
    %c0_i32_1 = arith.constant 0 : i32
    return %c0_i32, %c0_i32_0 : i32, i32
  }
  func.func @transform_6(%arg0: i32) -> (i32, i32) {
    %c0_i32 = arith.constant 0 : i32
    %c0_i32_0 = arith.constant 0 : i32
    %c0_i32_1 = arith.constant 0 : i32
    return %c0_i32, %c0_i32_0 : i32, i32
  }
  func.func @transform_7(%arg0: i32) -> (i32, i32) {
    %c0_i32 = arith.constant 0 : i32
    %c0_i32_0 = arith.constant 0 : i32
    %c0_i32_1 = arith.constant 0 : i32
    return %c0_i32, %c0_i32_0 : i32, i32
  }
  func.func @transform_8(%arg0: i32) -> (i32, i32) {
    %c0_i32 = arith.constant 0 : i32
    %c0_i32_0 = arith.constant 0 : i32
    %c0_i32_1 = arith.constant 0 : i32
    return %c0_i32, %c0_i32_0 : i32, i32
  }
  func.func @transform_9(%arg0: i32) -> (i32, i32) {
    %c0_i32 = arith.constant 0 : i32
    %c0_i32_0 = arith.constant 0 : i32
    return %arg0, %c0_i32 : i32, i32
  }
}

</mosaic_0001>

<bundles_post_ra>
// kernel: tpu_custom_call.1
= control target key start
LH: loop header
LB: loop body
LE: loop exit
PB: predicated region body
PF: predicated region fallthrough
CT: control target
= control target key end

     0   :  { %15 = vsyncpa [#allocation4], 0  ;;  %s1860_s0 = inlined_call_operand.vmem [shape: f32[16,16], index: 0, kind: input, shape index: {}]   ;;  %s1861_s1 = inlined_call_operand.vmem [shape: f32[16,8], index: 1, kind: input, shape index: {}]   ;;  %s1862_s2 = inlined_call_operand.hbm [shape: bf16[16,512], index: 2, kind: input, shape index: {}]   ;;  %s1863_s3 = inlined_call_operand.hbm [shape: bf16[8,512], index: 3, kind: input, shape index: {}]   ;;  %s1864_s4 = inlined_call_operand.vmem [shape: f32[1,512], index: 4, kind: input, shape index: {}]   ;;  %s1865_s5 = inlined_call_operand.hbm [shape: bf16[512,384], index: 5, kind: input, shape index: {}]   ;;  %s1866_s6 = inlined_call_operand.vmem [shape: f32[1,384], index: 6, kind: input, shape index: {}]   ;;  %s1867_s7 = inlined_call_operand.vmem [shape: f32[1,384], index: 7, kind: input, shape index: {}]   ;;  %s1868_s8 = inlined_call_operand.<no memory space> [shape: f32[1,1], index: 8, kind: input, shape index: {}]   ;;  %s1869_s9 = inlined_call_operand.vmem [shape: f32[16,1], index: 9, kind: output, shape index: {}]  }
   0x1   :  { %16 = vsyncpa [#allocation6], 0  ;;  %s39_s11 = sshll.u32 %s1863_s3, 4  ;;  %s1732_s12 = smov [#allocation5]   ;;  %s40_s11 = int_to_ptr.hbm [resolvable:$true] %s39_s11 }
   0x2   :  { %s41_s13 = sshll.u32 %s1732_s12, 4  ;;  %s25_s16 = sshll.u32 %s1862_s2, 4  ;;  %s42_s13 = int_to_ptr.vmem [resolvable:$true] %s41_s13  ;;  %s26_s16 = int_to_ptr.hbm [resolvable:$true] %s25_s16 }
   0x3   :  { %44 = dma.hbm_to_vmem [thread:$0]  %s40_s11, 256, %s42_s13, [#allocation6]  }
   0x4   :  { %s1733_s17 = smov [#allocation3]   ;;  %s1734_s19 = smov 256  }
   0x5   :  { %s27_s18 = sshll.u32 %s1733_s17, 4  ;;  %s1735_s20 = smov 16   ;;  %s28_s18 = int_to_ptr.vmem [resolvable:$true] %s27_s18 }
   0x6   :  { %33 = dma.hbm_to_vmem [thread:$0]  %s26_s16, 512, %s28_s18, [#allocation4], %s1734_s19, %s1734_s19, %s1735_s20  }
   0x7   :  { %s51_s3 = sshll.u32 %s1865_s5, 4  ;;  %s1736_s23 = smov [#allocation7]   ;;  %s52_s3 = int_to_ptr.hbm [resolvable:$true] %s51_s3 }
   0x8   :  { %s53_s24 = sshll.u32 %s1736_s23, 4  ;;  %s1737_s25 = smov 192   ;;  %s54_s24 = int_to_ptr.vmem [resolvable:$true] %s53_s24 }
   0x9   :  { %s1738_s26 = smov 12  }
   0xa   :  { %59 = dma.hbm_to_vmem [thread:$0]  %s52_s3, 12288, %s54_s24, [#allocation6], %s1737_s25, %s1737_s25, %s1738_s26  }
   0xb   :  { %1728 = dma.done.wait [#allocation4], 512  }
   0xc   :  { %1729 = vsyncadd [#allocation4], 4294966784 }
   0xd   :  { %1730 = dma.done.wait [#allocation6], 12544  }
   0xe   :  { %1731 = vsyncadd [#allocation6], 4294954752  ;;  %v89_v0 = vld [vmem:[#allocation5] sm:$0xff]  ;;  %v90_v1 = vld [vmem:[#allocation5 + $0x8] sm:$0xff]  ;;  %vm105_vm0 = vcmask 1043456   ;;  %vm101_vm1 = vcmask 64512  }
   0xf   :  { %v82_v2 = vld [vmem:[%s1861_s1] sm:$0xff]  ;;  %v93_v3 = vunpack.c.l.b16 %v89_v0  ;;  %v94_v4 = vunpack.c.h.b16 %v89_v0  ;;  %v95_v5 = vunpack.c.l.b16 %v90_v1  ;;  %v96_v6 = vunpack.c.h.b16 %v90_v1  ;;  %v83_v7 = vld [vmem:[%s1861_s1 + $0x8] sm:$0xff]  ;;  %v1552_v9 = vld [vmem:[#allocation3 + $0x14] sm:$0xf0] }
  0x10   :  { %v1155_v8 = vld [vmem:[#allocation3 + $0x8] sm:$0xf]  ;;  %v1550_v10 = vld [vmem:[#allocation3 + $0xc] sm:$0xf]  ;;  %v1157_v11 = vld [vmem:[#allocation3 + $0x18] sm:$0xf0]  ;;  %v84_v18 = vpack.c.bf16 %v83_v7, %v82_v2 }
  0x11   :  { %v97_v12 = vpack.c.b16 %v93_v3, %v93_v3  ;;  %v98_v13 = vpack.c.b16 %v94_v4, %v94_v4  ;;  %v99_v14 = vpack.c.b16 %v95_v5, %v95_v5  ;;  %v100_v15 = vpack.c.b16 %v96_v6, %v96_v6  ;;  %v1147_v16 = vld [vmem:[#allocation3] sm:$0xf]  ;;  %v1551_v17 = vld [vmem:[#allocation3 + $0xc] sm:$0xf0]  ;;  %v1549_v21 = vld [vmem:[#allocation3 + $0x4] sm:$0xf] }
  0x12   :  { %v1156_v19 = vor.u32 %v1552_v9, %v1155_v8  ;;  %v1160_v20 = vor.u32 %v1550_v10, %v1157_v11  ;;  %v1149_v22 = vld [vmem:[#allocation3 + $0x10] sm:$0xf0]  ;;  %v1251_v23 = vld [vmem:[#allocation7 + $0xa8] sm:$0xf]  ;;  %v1575_v28 = vld [vmem:[#allocation7 + $0xb0] sm:$0xf0]  ;;  %v1148_v31 = vor.u32 %v1551_v17, %v1147_v16 }
  0x13   :  { %v107_v24 = vsel %vm105_vm0, %v97_v12, 0  ;;  %v110_v25 = vsel %vm105_vm0, %v98_v13, 0  ;;  %v113_v26 = vsel %vm105_vm0, %v99_v14, 0  ;;  %v116_v27 = vsel %vm105_vm0, %v100_v15, 0  ;;  %v1347_v29 = vld [vmem:[#allocation7 + $0x168] sm:$0xf] }
  0x14   :  { %125 = vmatpush.bf16.msra.mxu0 %v107_v24  ;;  %139 = vmatpush.bf16.msra.mxu1 %v110_v25  ;;  %v1599_v30 = vld [vmem:[#allocation7 + $0x170] sm:$0xf0]  ;;  %v1152_v32 = vor.u32 %v1549_v21, %v1149_v22  ;;  %v1239_v33 = vld [vmem:[#allocation7 + $0x90] sm:$0xf]  ;;  %v1572_v34 = vld [vmem:[#allocation7 + $0x98] sm:$0xf0]  ;;  %v1252_v35 = vor.u32 %v1575_v28, %v1251_v23 }
  0x15   :  { %153 = vmatpush.bf16.msra.mxu2 %v113_v26  ;;  %167 = vmatpush.bf16.msra.mxu3 %v116_v27  ;;  %v1348_v36 = vor.u32 %v1599_v30, %v1347_v29  ;;  %v1443_v37 = vld [vmem:[#allocation7 + $0x228] sm:$0xf]  ;;  %v1623_v38 = vld [vmem:[#allocation7 + $0x230] sm:$0xf0]  ;;  %v1335_v40 = vld [vmem:[#allocation7 + $0x150] sm:$0xf]  ;;  %v1240_v49 = vor.u32 %v1572_v34, %v1239_v33 }
  0x16   :  { %v1539_v39 = vld [vmem:[#allocation7 + $0x2e8] sm:$0xf]  ;;  %v1596_v41 = vld [vmem:[#allocation7 + $0x158] sm:$0xf0]  ;;  %v1444_v42 = vor.u32 %v1623_v38, %v1443_v37  ;;  %v1647_v43 = vld [vmem:[#allocation7 + $0x2f0] sm:$0xf0] }
  0x17   :  { %1141 = vmatmul.msk.bf16.vlgmr.msra.gmra.mxu0 %vm101_vm1, %v84_v18  ;;  %1142 = vmatmul.msk.bf16.vlgmr.msra.gmra.mxu1 %vm101_vm1, %v84_v18  ;;  %v1540_v44 = vor.u32 %v1647_v43, %v1539_v39  ;;  %v1431_v45 = vld [vmem:[#allocation7 + $0x210] sm:$0xf]  ;;  %v1620_v46 = vld [vmem:[#allocation7 + $0x218] sm:$0xf0]  ;;  %v1336_v50 = vor.u32 %v1596_v41, %v1335_v40  ;;  %v1227_v51 = vld [vmem:[#allocation7 + $0x78] sm:$0xf] }
  0x18   :  { %1143 = vmatmul.msk.bf16.vlgmr.msra.gmra.mxu2 %vm101_vm1, %v84_v18  ;;  %1144 = vmatmul.msk.bf16.vlgmr.msra.gmra.mxu3 %vm101_vm1, %v84_v18  ;;  %v1527_v47 = vld [vmem:[#allocation7 + $0x2d0] sm:$0xf]  ;;  %v1644_v48 = vld [vmem:[#allocation7 + $0x2d8] sm:$0xf0]  ;;  %v1569_v52 = vld [vmem:[#allocation7 + $0x80] sm:$0xf0]  ;;  %v1432_v55 = vor.u32 %v1620_v46, %v1431_v45 }
  0x19   :  { %233 = vmatpush.bf16.msrb.mxu2 %v1156_v19  ;;  %247 = vmatpush.bf16.msrb.mxu3 %v1160_v20  ;;  %v1323_v53 = vld [vmem:[#allocation7 + $0x138] sm:$0xf]  ;;  %v1593_v54 = vld [vmem:[#allocation7 + $0x140] sm:$0xf0]  ;;  %v1528_v56 = vor.u32 %v1644_v48, %v1527_v47  ;;  %v1228_v61 = vor.u32 %v1569_v52, %v1227_v51  ;;  %v1215_v63 = vld [vmem:[#allocation7 + $0x60] sm:$0xf] }
  0x1a   :  { %205 = vmatpush.bf16.msrb.mxu0 %v1148_v31  ;;  %219 = vmatpush.bf16.msrb.mxu1 %v1152_v32  ;;  %v1419_v57 = vld [vmem:[#allocation7 + $0x1f8] sm:$0xf]  ;;  %v1617_v58 = vld [vmem:[#allocation7 + $0x200] sm:$0xf0]  ;;  %v1324_v62 = vor.u32 %v1593_v54, %v1323_v53  ;;  %v1566_v0 = vld [vmem:[#allocation7 + $0x68] sm:$0xf0] }
  0x1b   :  { %v1515_v59 = vld [vmem:[#allocation7 + $0x2b8] sm:$0xf]  ;;  %v1641_v60 = vld [vmem:[#allocation7 + $0x2c0] sm:$0xf0]  ;;  %v1311_v1 = vld [vmem:[#allocation7 + $0x120] sm:$0xf]  ;;  %v1420_v3 = vor.u32 %v1617_v58, %v1419_v57  ;;  %v1216_v9 = vor.u32 %v1566_v0, %v1215_v63 }
  0x1c   :  { %v1590_v2 = vld [vmem:[#allocation7 + $0x128] sm:$0xf0]  ;;  %v1516_v4 = vor.u32 %v1641_v60, %v1515_v59  ;;  %v79_v5 = vld [vmem:[%s1860_s0] sm:$0xff]  ;;  %v80_v6 = vld [vmem:[%s1860_s0 + $0x8] sm:$0xff]  ;;  %vm194_vm2 = vcmask 130048   ;;  %vm1132_vm3 = vcmask 7168  }
  0x1d   :  { %960 = vmatpush.bf16.msra.mxu2 %v1444_v42  ;;  %974 = vmatpush.bf16.msra.mxu3 %v1540_v44  ;;  %v1203_v7 = vld [vmem:[#allocation7 + $0x48] sm:$0xf]  ;;  %v1407_v8 = vld [vmem:[#allocation7 + $0x1e0] sm:$0xf]  ;;  %v1312_v10 = vor.u32 %v1590_v2, %v1311_v1  ;;  %v1614_v11 = vld [vmem:[#allocation7 + $0x1e8] sm:$0xf0]  ;;  %v81_v14 = vpack.c.bf16 %v80_v6, %v79_v5 }
  0x1e   :  { %932 = vmatpush.bf16.msra.mxu0 %v1252_v35  ;;  %946 = vmatpush.bf16.msra.mxu1 %v1348_v36  ;;  %v1503_v12 = vld [vmem:[#allocation7 + $0x2a0] sm:$0xf]  ;;  %v1638_v13 = vld [vmem:[#allocation7 + $0x2a8] sm:$0xf0]  ;;  %v1563_v15 = vld [vmem:[#allocation7 + $0x50] sm:$0xf0]  ;;  %v1408_v18 = vor.u32 %v1614_v11, %v1407_v8 }
  0x1f   :  { %v1299_v16 = vld [vmem:[#allocation7 + $0x108] sm:$0xf]  ;;  %v1587_v17 = vld [vmem:[#allocation7 + $0x110] sm:$0xf0]  ;;  %v1504_v19 = vor.u32 %v1638_v13, %v1503_v12  ;;  %v1191_v20 = vld [vmem:[#allocation7 + $0x30] sm:$0xf]  ;;  %v1204_v22 = vor.u32 %v1563_v15, %v1203_v7 }
  0x20   :  { %v1395_v21 = vld [vmem:[#allocation7 + $0x1c8] sm:$0xf]  ;;  %v1300_v23 = vor.u32 %v1587_v17, %v1299_v16  ;;  %v1611_v24 = vld [vmem:[#allocation7 + $0x1d0] sm:$0xf0]  ;;  %v1560_v27 = vld [vmem:[#allocation7 + $0x38] sm:$0xf0] }
  0x21   :  { %961 = vmatpush.bf16.msra.mxu2 %v1432_v55  ;;  %975 = vmatpush.bf16.msra.mxu3 %v1528_v56  ;;  %v1491_v25 = vld [vmem:[#allocation7 + $0x288] sm:$0xf]  ;;  %v1635_v26 = vld [vmem:[#allocation7 + $0x290] sm:$0xf0]  ;;  %v1287_v28 = vld [vmem:[#allocation7 + $0xf0] sm:$0xf]  ;;  %v1396_v30 = vor.u32 %v1611_v24, %v1395_v21  ;;  %v1192_v32 = vor.u32 %v1560_v27, %v1191_v20 }
  0x22   :  { %933 = vmatpush.bf16.msra.mxu0 %v1240_v49  ;;  %947 = vmatpush.bf16.msra.mxu1 %v1336_v50  ;;  %v1584_v29 = vld [vmem:[#allocation7 + $0xf8] sm:$0xf0]  ;;  %v1492_v31 = vor.u32 %v1635_v26, %v1491_v25  ;;  %v1179_v34 = vld [vmem:[#allocation7 + $0x18] sm:$0xf]  ;;  %v1557_v35 = vld [vmem:[#allocation7 + $0x20] sm:$0xf0] }
  0x23   :  { %v1288_v33 = vor.u32 %v1584_v29, %v1287_v28  ;;  %v1275_v36 = vld [vmem:[#allocation7 + $0xd8] sm:$0xf]  ;;  %v1180_v37 = vor.u32 %v1557_v35, %v1179_v34  ;;  %v1581_v38 = vld [vmem:[#allocation7 + $0xe0] sm:$0xf0]  ;;  %v1383_v40 = vld [vmem:[#allocation7 + $0x1b0] sm:$0xf] }
  0x24   :  { %v1276_v39 = vor.u32 %v1581_v38, %v1275_v36  ;;  %v1608_v41 = vld [vmem:[#allocation7 + $0x1b8] sm:$0xf0]  ;;  %v1479_v42 = vld [vmem:[#allocation7 + $0x270] sm:$0xf]  ;;  %v1167_v45 = vld [vmem:[#allocation7] sm:$0xf] }
  0x25   :  { %962 = vmatpush.bf16.msra.mxu2 %v1420_v3  ;;  %976 = vmatpush.bf16.msra.mxu3 %v1516_v4  ;;  %v1384_v43 = vor.u32 %v1608_v41, %v1383_v40  ;;  %v1632_v44 = vld [vmem:[#allocation7 + $0x278] sm:$0xf0]  ;;  %v1554_v46 = vld [vmem:[#allocation7 + $0x8] sm:$0xf0]  ;;  %v1263_v49 = vld [vmem:[#allocation7 + $0xc0] sm:$0xf] }
  0x26   :  { %934 = vmatpush.bf16.msra.mxu0 %v1228_v61  ;;  %948 = vmatpush.bf16.msra.mxu1 %v1324_v62  ;;  %v1480_v47 = vor.u32 %v1632_v44, %v1479_v42  ;;  %v1168_v48 = vor.u32 %v1554_v46, %v1167_v45  ;;  %v1578_v50 = vld [vmem:[#allocation7 + $0xc8] sm:$0xf0]  ;;  %v1253_v53 = vld [vmem:[#allocation7 + $0xb4] sm:$0xf0]  ;;  %v1605_v59 = vld [vmem:[#allocation7 + $0x1a0] sm:$0xf0] }
  0x27   :  { %1161 = vmatmul.msk.bf16.vlgmr.msrb.gmra.mxu0 %vm194_vm2, %v81_v14  ;;  %1162 = vmatmul.msk.bf16.vlgmr.msrb.gmra.mxu1 %vm194_vm2, %v81_v14  ;;  %v1574_v51 = vld [vmem:[#allocation7 + $0xac] sm:$0xf]  ;;  %v1264_v52 = vor.u32 %v1578_v50, %v1263_v49  ;;  %v1349_v55 = vld [vmem:[#allocation7 + $0x174] sm:$0xf0]  ;;  %v1629_v62 = vld [vmem:[#allocation7 + $0x260] sm:$0xf0] }
  0x28   :  { %1163 = vmatmul.msk.bf16.vlgmr.msrb.gmra.mxu2 %vm194_vm2, %v81_v14  ;;  %1164 = vmatmul.msk.bf16.vlgmr.msrb.gmra.mxu3 %vm194_vm2, %v81_v14  ;;  %v1598_v54 = vld [vmem:[#allocation7 + $0x16c] sm:$0xf]  ;;  %v1256_v56 = vor.u32 %v1574_v51, %v1253_v53  ;;  %v1371_v58 = vld [vmem:[#allocation7 + $0x198] sm:$0xf]  ;;  %v1571_v0 = vld [vmem:[#allocation7 + $0x94] sm:$0xf] }
  0x29   :  { %963 = vmatpush.bf16.msra.mxu2 %v1408_v18  ;;  %977 = vmatpush.bf16.msra.mxu3 %v1504_v19  ;;  %v1352_v57 = vor.u32 %v1598_v54, %v1349_v55  ;;  %v1467_v60 = vld [vmem:[#allocation7 + $0x258] sm:$0xf]  ;;  %v1372_v61 = vor.u32 %v1605_v59, %v1371_v58  ;;  %v1241_v1 = vld [vmem:[#allocation7 + $0x9c] sm:$0xf0]  ;;  %v1595_v2 = vld [vmem:[#allocation7 + $0x154] sm:$0xf] }
  0x2a   :  { %935 = vmatpush.bf16.msra.mxu0 %v1216_v9  ;;  %949 = vmatpush.bf16.msra.mxu1 %v1312_v10  ;;  %v1468_v63 = vor.u32 %v1629_v62, %v1467_v60  ;;  %v1244_v3 = vor.u32 %v1571_v0, %v1241_v1  ;;  %v1337_v4 = vld [vmem:[#allocation7 + $0x15c] sm:$0xf0]  ;;  %v1602_v6 = vld [vmem:[#allocation7 + $0x188] sm:$0xf0]  ;;  %v1445_v13 = vld [vmem:[#allocation7 + $0x234] sm:$0xf0] }
  0x2b   :  { %v1359_v5 = vld [vmem:[#allocation7 + $0x180] sm:$0xf]  ;;  %v1340_v7 = vor.u32 %v1595_v2, %v1337_v4  ;;  %v1626_v10 = vld [vmem:[#allocation7 + $0x248] sm:$0xf0]  ;;  %v1541_v15 = vld [vmem:[#allocation7 + $0x2f4] sm:$0xf0] }
  0x2c   :  { %v1360_v8 = vor.u32 %v1602_v6, %v1359_v5  ;;  %v1455_v9 = vld [vmem:[#allocation7 + $0x240] sm:$0xf]  ;;  %v1622_v11 = vld [vmem:[#allocation7 + $0x22c] sm:$0xf]  ;;  %v1568_v18 = vld [vmem:[#allocation7 + $0x7c] sm:$0xf] }
  0x2d   :  { %964 = vmatpush.bf16.msra.mxu2 %v1396_v30  ;;  %978 = vmatpush.bf16.msra.mxu3 %v1492_v31  ;;  %v1456_v12 = vor.u32 %v1626_v10, %v1455_v9  ;;  %v1646_v14 = vld [vmem:[#allocation7 + $0x2ec] sm:$0xf]  ;;  %v1448_v16 = vor.u32 %v1622_v11, %v1445_v13  ;;  %v1229_v19 = vld [vmem:[#allocation7 + $0x84] sm:$0xf0]  ;;  %v1592_v20 = vld [vmem:[#allocation7 + $0x13c] sm:$0xf] }
  0x2e   :  { %936 = vmatpush.bf16.msra.mxu0 %v1204_v22  ;;  %950 = vmatpush.bf16.msra.mxu1 %v1300_v23  ;;  %v1544_v17 = vor.u32 %v1646_v14, %v1541_v15  ;;  %v1232_v21 = vor.u32 %v1568_v18, %v1229_v19  ;;  %v1325_v22 = vld [vmem:[#allocation7 + $0x144] sm:$0xf0]  ;;  %v1619_v24 = vld [vmem:[#allocation7 + $0x214] sm:$0xf]  ;;  %v1433_v25 = vld [vmem:[#allocation7 + $0x21c] sm:$0xf0] }
  0x2f   :  { %v1328_v23 = vor.u32 %v1592_v20, %v1325_v22  ;;  %v1643_v26 = vld [vmem:[#allocation7 + $0x2d4] sm:$0xf]  ;;  %v1436_v27 = vor.u32 %v1619_v24, %v1433_v25  ;;  %v1529_v28 = vld [vmem:[#allocation7 + $0x2dc] sm:$0xf0]  ;;  %v1565_v30 = vld [vmem:[#allocation7 + $0x64] sm:$0xf] }
  0x30   :  { %v1532_v29 = vor.u32 %v1643_v26, %v1529_v28  ;;  %v1217_v31 = vld [vmem:[#allocation7 + $0x6c] sm:$0xf0]  ;;  %v1616_v36 = vld [vmem:[#allocation7 + $0x1fc] sm:$0xf]  ;;  %v1517_v40 = vld [vmem:[#allocation7 + $0x2c4] sm:$0xf0] }
  0x31   :  { %965 = vmatpush.bf16.msra.mxu2 %v1384_v43  ;;  %979 = vmatpush.bf16.msra.mxu3 %v1480_v47  ;;  %v1313_v34 = vld [vmem:[#allocation7 + $0x12c] sm:$0xf0]  ;;  %v1562_v42 = vld [vmem:[#allocation7 + $0x4c] sm:$0xf]  ;;  %v1205_v43 = vld [vmem:[#allocation7 + $0x54] sm:$0xf0] }
  0x32   :  { %937 = vmatpush.bf16.msra.mxu0 %v1192_v32  ;;  %951 = vmatpush.bf16.msra.mxu1 %v1288_v33  ;;  %v1589_v32 = vld [vmem:[#allocation7 + $0x124] sm:$0xf]  ;;  %v1220_v33 = vor.u32 %v1565_v30, %v1217_v31  ;;  %v1586_v44 = vld [vmem:[#allocation7 + $0x10c] sm:$0xf]  ;;  %v1208_v45 = vor.u32 %v1562_v42, %v1205_v43  ;;  %v1301_v46 = vld [vmem:[#allocation7 + $0x114] sm:$0xf0] }
  0x33   :  { %v1316_v35 = vor.u32 %v1589_v32, %v1313_v34  ;;  %v1304_v47 = vor.u32 %v1586_v44, %v1301_v46  ;;  %v1409_v49 = vld [vmem:[#allocation7 + $0x1ec] sm:$0xf0]  ;;  %v1637_v50 = vld [vmem:[#allocation7 + $0x2a4] sm:$0xf]  ;;  %v1559_v54 = vld [vmem:[#allocation7 + $0x34] sm:$0xf] }
  0x34   :  { %v1193_v55 = vld [vmem:[#allocation7 + $0x3c] sm:$0xf0]  ;;  %v1610_v60 = vld [vmem:[#allocation7 + $0x1cc] sm:$0xf]  ;;  %v1493_v0 = vld [vmem:[#allocation7 + $0x294] sm:$0xf0] }
  0x35   :  { %966 = vmatpush.bf16.msra.mxu2 %v1372_v61  ;;  %980 = vmatpush.bf16.msra.mxu3 %v1468_v63  ;;  %v1289_v58 = vld [vmem:[#allocation7 + $0xfc] sm:$0xf0]  ;;  %v1397_v61 = vld [vmem:[#allocation7 + $0x1d4] sm:$0xf0]  ;;  %v1634_v62 = vld [vmem:[#allocation7 + $0x28c] sm:$0xf] }
  0x36   :  { %938 = vmatpush.bf16.msra.mxu0 %v1180_v37  ;;  %952 = vmatpush.bf16.msra.mxu1 %v1276_v39  ;;  %v1421_v37 = vld [vmem:[#allocation7 + $0x204] sm:$0xf0]  ;;  %v1640_v39 = vld [vmem:[#allocation7 + $0x2bc] sm:$0xf]  ;;  %v1400_v63 = vor.u32 %v1610_v60, %v1397_v61  ;;  %v1496_v1 = vor.u32 %v1634_v62, %v1493_v0  ;;  %v1385_v9 = vld [vmem:[#allocation7 + $0x1bc] sm:$0xf0] }
  0x37   :  { %v1424_v38 = vor.u32 %v1616_v36, %v1421_v37  ;;  %v1520_v41 = vor.u32 %v1640_v39, %v1517_v40  ;;  %v1556_v2 = vld [vmem:[#allocation7 + $0x1c] sm:$0xf]  ;;  %v1277_v6 = vld [vmem:[#allocation7 + $0xe4] sm:$0xf0]  ;;  %v1631_v10 = vld [vmem:[#allocation7 + $0x274] sm:$0xf] }
  0x38   :  { %v1580_v4 = vld [vmem:[#allocation7 + $0xdc] sm:$0xf]  ;;  %v1553_v14 = vld [vmem:[#allocation7 + $0x4] sm:$0xf]  ;;  %v1169_v15 = vld [vmem:[#allocation7 + $0xc] sm:$0xf0] }
  0x39   :  { %967 = vmatpush.bf16.msra.mxu2 %v1360_v8  ;;  %981 = vmatpush.bf16.msra.mxu3 %v1456_v12  ;;  %v1607_v8 = vld [vmem:[#allocation7 + $0x1b4] sm:$0xf]  ;;  %v1481_v12 = vld [vmem:[#allocation7 + $0x27c] sm:$0xf0]  ;;  %v1172_v19 = vor.u32 %v1553_v14, %v1169_v15  ;;  %v1265_v20 = vld [vmem:[#allocation7 + $0xcc] sm:$0xf0] }
  0x3a   :  { %939 = vmatpush.bf16.msra.mxu0 %v1168_v48  ;;  %953 = vmatpush.bf16.msra.mxu1 %v1264_v52  ;;  %v1613_v48 = vld [vmem:[#allocation7 + $0x1e4] sm:$0xf]  ;;  %v1505_v52 = vld [vmem:[#allocation7 + $0x2ac] sm:$0xf0]  ;;  %v1388_v11 = vor.u32 %v1607_v8, %v1385_v9  ;;  %v1484_v13 = vor.u32 %v1631_v10, %v1481_v12  ;;  %v1604_v22 = vld [vmem:[#allocation7 + $0x19c] sm:$0xf] }
  0x3b   :  { %v1412_v51 = vor.u32 %v1613_v48, %v1409_v49  ;;  %v1508_v53 = vor.u32 %v1637_v50, %v1505_v52  ;;  %v1628_v24 = vld [vmem:[#allocation7 + $0x25c] sm:$0xf]  ;;  %v1469_v25 = vld [vmem:[#allocation7 + $0x264] sm:$0xf0]  ;;  %v1601_v28 = vld [vmem:[#allocation7 + $0x184] sm:$0xf] }
  0x3c   :  { %v1625_v31 = vld [vmem:[#allocation7 + $0x244] sm:$0xf]  ;;  %v1457_v32 = vld [vmem:[#allocation7 + $0x24c] sm:$0xf0]  ;;  %v1600_v60 = vld [vmem:[#allocation7 + $0x178] sm:$0xf0] }
  0x3d   :  { %1016 = vmatpush.bf16.msrb.mxu2 %v1448_v16  ;;  %1030 = vmatpush.bf16.msrb.mxu3 %v1544_v17  ;;  %v1577_v16 = vld [vmem:[#allocation7 + $0xc4] sm:$0xf]  ;;  %v254_v42 = vld [vmem:[%s1864_s4] sm:$0xf] }
  0x3e   :  { %988 = vmatpush.bf16.msrb.mxu0 %v1256_v56  ;;  %1002 = vmatpush.bf16.msrb.mxu1 %v1352_v57  ;;  %v1583_v56 = vld [vmem:[#allocation7 + $0xf4] sm:$0xf]  ;;  %v1196_v57 = vor.u32 %v1559_v54, %v1193_v55  ;;  %v256_v44 = vperm.slane %v254_v42, 0  ;;  %v257_v46 = vperm.slane %v254_v42, 1  ;;  %v1259_v55 = vld [vmem:[#allocation7 + $0xb0] sm:$0xf] }
  0x3f   :  { %v1292_v59 = vor.u32 %v1583_v56, %v1289_v58  ;;  %v1576_v58 = vld [vmem:[#allocation7 + $0xb8] sm:$0xf0]  ;;  %v258_v62 = vperm.slane %v254_v42, 2  ;;  %v259_v0 = vperm.slane %v254_v42, 3  ;;  %v1573_v8 = vld [vmem:[#allocation7 + $0xa0] sm:$0xf0] }
  0x40   :  { %v1597_v14 = vld [vmem:[#allocation7 + $0x160] sm:$0xf0] }
  0x41   :  { %1017 = vmatpush.bf16.msrb.mxu2 %v1436_v27  ;;  %1031 = vmatpush.bf16.msrb.mxu3 %v1532_v29  ;;  %v1472_v27 = vor.u32 %v1628_v24, %v1469_v25  ;;  %v1361_v29 = vld [vmem:[#allocation7 + $0x18c] sm:$0xf0] }
  0x42   :  { %989 = vmatpush.bf16.msrb.mxu0 %v1244_v3  ;;  %1003 = vmatpush.bf16.msrb.mxu1 %v1340_v7  ;;  %v1181_v3 = vld [vmem:[#allocation7 + $0x24] sm:$0xf0]  ;;  %v1280_v7 = vor.u32 %v1580_v4, %v1277_v6  ;;  %v1364_v30 = vor.u32 %v1601_v28, %v1361_v29  ;;  %v1570_v28 = vld [vmem:[#allocation7 + $0x88] sm:$0xf0]  ;;  %v1331_v29 = vld [vmem:[#allocation7 + $0x140] sm:$0xf] }
  0x43   :  { %v1184_v5 = vor.u32 %v1556_v2, %v1181_v3 }
  0x45   :  { %1018 = vmatpush.bf16.msrb.mxu2 %v1424_v38  ;;  %1032 = vmatpush.bf16.msrb.mxu3 %v1520_v41 }
  0x46   :  { %990 = vmatpush.bf16.msrb.mxu0 %v1232_v21  ;;  %1004 = vmatpush.bf16.msrb.mxu1 %v1328_v23  ;;  %v1268_v21 = vor.u32 %v1577_v16, %v1265_v20  ;;  %v1373_v23 = vld [vmem:[#allocation7 + $0x1a4] sm:$0xf0]  ;;  %v1451_v20 = vld [vmem:[#allocation7 + $0x230] sm:$0xf] }
  0x47   :  { %v1376_v26 = vor.u32 %v1604_v22, %v1373_v23  ;;  %v1547_v22 = vld [vmem:[#allocation7 + $0x2f0] sm:$0xf] }
  0x49   :  { %1019 = vmatpush.bf16.msrb.mxu2 %v1412_v51  ;;  %1033 = vmatpush.bf16.msrb.mxu3 %v1508_v53 }
  0x4a   :  { %991 = vmatpush.bf16.msrb.mxu0 %v1220_v33  ;;  %1005 = vmatpush.bf16.msrb.mxu1 %v1316_v35  ;;  %v1460_v35 = vor.u32 %v1625_v31, %v1457_v32 }
  0x4d   :  { %1020 = vmatpush.bf16.msrb.mxu2 %v1400_v63  ;;  %1034 = vmatpush.bf16.msrb.mxu3 %v1496_v1 }
  0x4e   :  { %992 = vmatpush.bf16.msrb.mxu0 %v1208_v45  ;;  %1006 = vmatpush.bf16.msrb.mxu1 %v1304_v47 }
  0x51   :  { %1021 = vmatpush.bf16.msrb.mxu2 %v1388_v11  ;;  %1035 = vmatpush.bf16.msrb.mxu3 %v1484_v13  ;;  %v1343_v13 = vld [vmem:[#allocation7 + $0x158] sm:$0xf] }
  0x52   :  { %993 = vmatpush.bf16.msrb.mxu0 %v1196_v57  ;;  %1007 = vmatpush.bf16.msrb.mxu1 %v1292_v59  ;;  %v1355_v59 = vld [vmem:[#allocation7 + $0x170] sm:$0xf]  ;;  %v1344_v25 = vor.u32 %v1597_v14, %v1343_v13  ;;  %v1612_v14 = vld [vmem:[#allocation7 + $0x1d8] sm:$0xf0] }
  0x53   :  { %v1356_v6 = vor.u32 %v1600_v60, %v1355_v59  ;;  %v1307_v59 = vld [vmem:[#allocation7 + $0x110] sm:$0xf]  ;;  %v1588_v60 = vld [vmem:[#allocation7 + $0x118] sm:$0xf0] }
  0x54   :  { %v1403_v13 = vld [vmem:[#allocation7 + $0x1d0] sm:$0xf] }
  0x55   :  { %1022 = vmatpush.bf16.msrb.mxu2 %v1376_v26  ;;  %1036 = vmatpush.bf16.msrb.mxu3 %v1472_v27  ;;  %v1648_v26 = vld [vmem:[#allocation7 + $0x2f8] sm:$0xf0]  ;;  %v1235_v27 = vld [vmem:[#allocation7 + $0x80] sm:$0xf] }
  0x56   :  { %994 = vmatpush.bf16.msrb.mxu0 %v1184_v5  ;;  %1008 = vmatpush.bf16.msrb.mxu1 %v1280_v7  ;;  %v1260_v5 = vor.u32 %v1576_v58, %v1259_v55  ;;  %v1247_v7 = vld [vmem:[#allocation7 + $0x98] sm:$0xf]  ;;  %v1523_v55 = vld [vmem:[#allocation7 + $0x2c0] sm:$0xf]  ;;  %v1564_v58 = vld [vmem:[#allocation7 + $0x58] sm:$0xf0] }
  0x59   :  { %1023 = vmatpush.bf16.msrb.mxu2 %v1364_v30  ;;  %1037 = vmatpush.bf16.msrb.mxu3 %v1460_v35  ;;  %v1594_v30 = vld [vmem:[#allocation7 + $0x148] sm:$0xf0] }
  0x5a   :  { %995 = vmatpush.bf16.msrb.mxu0 %v1172_v19  ;;  %1009 = vmatpush.bf16.msrb.mxu1 %v1268_v21  ;;  %v1248_v19 = vor.u32 %v1573_v8, %v1247_v7  ;;  %v1624_v21 = vld [vmem:[#allocation7 + $0x238] sm:$0xf0]  ;;  %v1332_v42 = vor.u32 %v1594_v30, %v1331_v29  ;;  %v1295_v7 = vld [vmem:[#allocation7 + $0xf8] sm:$0xf]  ;;  %v1585_v8 = vld [vmem:[#allocation7 + $0x100] sm:$0xf0] }
  0x5b   :  { %v1452_v35 = vor.u32 %v1624_v21, %v1451_v20  ;;  %v1558_v20 = vld [vmem:[#allocation7 + $0x28] sm:$0xf0]  ;;  %v1283_v21 = vld [vmem:[#allocation7 + $0xe0] sm:$0xf] }
  0x94   :  { %v127_v17 = vpop.f32.mrf.mxu0  ;;  %v141_v18 = vpop.f32.mrf.mxu1 }
  0x9b   :  { %v155_v33 = vpop.f32.mrf.mxu2  ;;  %v169_v34 = vpop.f32.mrf.mxu3 }
  0x9c   :  { %v129_v36 = vpop.f32.mrf.mxu0  ;;  %v143_v37 = vpop.f32.mrf.mxu1 }
  0xa3   :  { %v157_v38 = vpop.f32.mrf.mxu2  ;;  %v171_v39 = vpop.f32.mrf.mxu3 }
  0xa4   :  { %v207_v40 = vpop.f32.mrf.mxu0  ;;  %v221_v41 = vpop.f32.mrf.mxu1 }
  0xa5   :  { %v208_v43 = vadd.f32 %v207_v40, %v127_v17  ;;  %v222_v45 = vadd.f32 %v221_v41, %v141_v18 }
  0xa7   :  { %v264_v51 = vadd.f32 %v256_v44, %v208_v43  ;;  %v265_v52 = vadd.f32 %v257_v46, %v222_v45  ;;  %v1535_v43 = vld [vmem:[#allocation7 + $0x2d8] sm:$0xf]  ;;  %v1223_v45 = vld [vmem:[#allocation7 + $0x68] sm:$0xf] }
  0xa9   :  { %v272_v1 = vmax.f32 %v264_v51, 0.0  ;;  %v273_v2 = vmax.f32 %v265_v52, 0.0  ;;  %v1427_v51 = vld [vmem:[#allocation7 + $0x200] sm:$0xf] }
  0xab   :  { %v235_v47 = vpop.f32.mrf.mxu2  ;;  %v249_v48 = vpop.f32.mrf.mxu3 }
  0xac   :  { %v209_v49 = vpop.f32.mrf.mxu0  ;;  %v223_v50 = vpop.f32.mrf.mxu1  ;;  %v236_v61 = vadd.f32 %v235_v47, %v155_v33  ;;  %v250_v63 = vadd.f32 %v249_v48, %v169_v34  ;;  %v1319_v47 = vld [vmem:[#allocation7 + $0x128] sm:$0xf]  ;;  %v1591_v48 = vld [vmem:[#allocation7 + $0x130] sm:$0xf0] }
  0xad   :  { %v210_v53 = vadd.f32 %v209_v49, %v129_v36  ;;  %v224_v54 = vadd.f32 %v223_v50, %v143_v37  ;;  %v1548_v36 = vor.u32 %v1648_v26, %v1547_v22  ;;  %v1236_v37 = vor.u32 %v1570_v28, %v1235_v27  ;;  %v1582_v22 = vld [vmem:[#allocation7 + $0xe8] sm:$0xf0]  ;;  %v1609_v26 = vld [vmem:[#allocation7 + $0x1c0] sm:$0xf0]  ;;  %v1487_v27 = vld [vmem:[#allocation7 + $0x278] sm:$0xf] }
  0xae   :  { %v266_v15 = vadd.f32 %v258_v62, %v236_v61  ;;  %v267_v16 = vadd.f32 %v259_v0, %v250_v63  ;;  %v1415_v63 = vld [vmem:[#allocation7 + $0x1e8] sm:$0xf]  ;;  %v1633_v28 = vld [vmem:[#allocation7 + $0x280] sm:$0xf0]  ;;  %v1284_v30 = vor.u32 %v1582_v22, %v1283_v21 }
  0xaf   :  { %v268_v56 = vadd.f32 %v256_v44, %v210_v53  ;;  %v269_v57 = vadd.f32 %v257_v46, %v224_v54  ;;  %v1645_v44 = vld [vmem:[#allocation7 + $0x2e0] sm:$0xf0]  ;;  %v1567_v46 = vld [vmem:[#allocation7 + $0x70] sm:$0xf0]  ;;  %v1320_v53 = vor.u32 %v1591_v48, %v1319_v47  ;;  %v1618_v54 = vld [vmem:[#allocation7 + $0x208] sm:$0xf0] }
  0xb0   :  { %v274_v31 = vmax.f32 %v266_v15, 0.0  ;;  %v275_v32 = vmax.f32 %v267_v16, 0.0  ;;  %v1536_v50 = vor.u32 %v1645_v44, %v1535_v43  ;;  %v1224_v52 = vor.u32 %v1567_v46, %v1223_v45  ;;  %v1499_v15 = vld [vmem:[#allocation7 + $0x290] sm:$0xf]  ;;  %v1636_v16 = vld [vmem:[#allocation7 + $0x298] sm:$0xf0] }
  0xb1   :  { %v276_v3 = vmax.f32 %v268_v56, 0.0  ;;  %v277_v4 = vmax.f32 %v269_v57, 0.0  ;;  %v1642_v56 = vld [vmem:[#allocation7 + $0x2c8] sm:$0xf0]  ;;  %v1211_v57 = vld [vmem:[#allocation7 + $0x50] sm:$0xf]  ;;  %v1428_v61 = vor.u32 %v1618_v54, %v1427_v51 }
  0xb2   :  { %v1367_v47 = vld [vmem:[#allocation7 + $0x188] sm:$0xf]  ;;  %v1603_v48 = vld [vmem:[#allocation7 + $0x190] sm:$0xf0] }
  0xb3   :  { %v1825_v9 = vpack.c.bf16 %v276_v3, %v272_v1  ;;  %v1827_v10 = vpack.c.bf16 %v277_v4, %v273_v2  ;;  %v237_v11 = vpop.f32.mrf.mxu2  ;;  %v251_v12 = vpop.f32.mrf.mxu3  ;;  %v1511_v1 = vld [vmem:[#allocation7 + $0x2a8] sm:$0xf]  ;;  %v1639_v2 = vld [vmem:[#allocation7 + $0x2b0] sm:$0xf0]  ;;  %v1212_v3 = vor.u32 %v1564_v58, %v1211_v57  ;;  %v1308_v4 = vor.u32 %v1588_v60, %v1307_v59 }
  0xb4   :  { %v238_v17 = vadd.f32 %v237_v11, %v157_v38  ;;  %v252_v18 = vadd.f32 %v251_v12, %v171_v39  ;;  %v1439_v38 = vld [vmem:[#allocation7 + $0x218] sm:$0xf]  ;;  %v1621_v39 = vld [vmem:[#allocation7 + $0x220] sm:$0xf0]  ;;  %v1512_v12 = vor.u32 %v1639_v2, %v1511_v1  ;;  %v1368_v51 = vor.u32 %v1603_v48, %v1367_v47 }
  0xb5   :  { %940 = vmatmul.bf16.vlgmr.msra.gmra.mxu0 %v1825_v9  ;;  %954 = vmatmul.bf16.vlgmr.msra.gmra.mxu1 %v1827_v10  ;;  %v1440_v49 = vor.u32 %v1621_v39, %v1439_v38  ;;  %v1606_v38 = vld [vmem:[#allocation7 + $0x1a8] sm:$0xf0]  ;;  %v1475_v39 = vld [vmem:[#allocation7 + $0x260] sm:$0xf] }
  0xb6   :  { %v270_v23 = vadd.f32 %v258_v62, %v238_v17  ;;  %v271_v24 = vadd.f32 %v259_v0, %v252_v18  ;;  %1044 = vmatpush.bf16.msra.mxu0 %v1260_v5  ;;  %1058 = vmatpush.bf16.msra.mxu1 %v1356_v6  ;;  %v1524_v62 = vor.u32 %v1642_v56, %v1523_v55  ;;  %v1615_v0 = vld [vmem:[#allocation7 + $0x1f0] sm:$0xf0]  ;;  %v1199_v5 = vld [vmem:[#allocation7 + $0x38] sm:$0xf]  ;;  %v1561_v6 = vld [vmem:[#allocation7 + $0x40] sm:$0xf0] }
  0xb7   :  { %v1416_v11 = vor.u32 %v1615_v0, %v1415_v63  ;;  %v1200_v17 = vor.u32 %v1561_v6, %v1199_v5  ;;  %v1296_v18 = vor.u32 %v1585_v8, %v1295_v7 }
  0xb8   :  { %v278_v33 = vmax.f32 %v270_v23, 0.0  ;;  %v279_v34 = vmax.f32 %v271_v24, 0.0  ;;  %v1404_v23 = vor.u32 %v1612_v14, %v1403_v13  ;;  %v1500_v24 = vor.u32 %v1636_v16, %v1499_v15 }
  0xba   :  { %v1831_v40 = vpack.c.bf16 %v278_v33, %v274_v31  ;;  %v1833_v41 = vpack.c.bf16 %v279_v34, %v275_v32  ;;  %1045 = vmatpush.bf16.msra.mxu0 %v1248_v19  ;;  %1059 = vmatpush.bf16.msra.mxu1 %v1344_v25  ;;  %v1187_v19 = vld [vmem:[#allocation7 + $0x20] sm:$0xf]  ;;  %v1391_v25 = vld [vmem:[#allocation7 + $0x1b8] sm:$0xf]  ;;  %v1175_v31 = vld [vmem:[#allocation7 + $0x8] sm:$0xf] }
  0xbb   :  { %v1188_v29 = vor.u32 %v1558_v20, %v1187_v19  ;;  %v1555_v32 = vld [vmem:[#allocation7 + $0x10] sm:$0xf0]  ;;  %v1271_v33 = vld [vmem:[#allocation7 + $0xc8] sm:$0xf]  ;;  %v1106_v20 = vld [vmem:[%s1867_s7] sm:$0x7] }
  0xbc   :  { %968 = vmatmul.bf16.vlgmr.msra.gmra.mxu2 %v1831_v40  ;;  %982 = vmatmul.bf16.vlgmr.msra.gmra.mxu3 %v1833_v41  ;;  %v1579_v34 = vld [vmem:[#allocation7 + $0xd0] sm:$0xf0]  ;;  %v1176_v43 = vor.u32 %v1555_v32, %v1175_v31  ;;  %v1109_v22 = vperm.slane %v1106_v20, 1  ;;  %v1108_v31 = vperm.slane %v1106_v20, 0 }
  0xbd   :  { %1072 = vmatpush.bf16.msra.mxu2 %v1452_v35  ;;  %1086 = vmatpush.bf16.msra.mxu3 %v1548_v36  ;;  %v1392_v35 = vor.u32 %v1609_v26, %v1391_v25  ;;  %v1488_v36 = vor.u32 %v1633_v28, %v1487_v27  ;;  %v1272_v44 = vor.u32 %v1579_v34, %v1271_v33  ;;  %v1110_v34 = vperm.slane %v1106_v20, 2 }
  0xbe   :  { %1046 = vmatpush.bf16.msra.mxu0 %v1236_v37  ;;  %1060 = vmatpush.bf16.msra.mxu1 %v1332_v42  ;;  %v1379_v37 = vld [vmem:[#allocation7 + $0x1a0] sm:$0xf]  ;;  %v1630_v42 = vld [vmem:[#allocation7 + $0x268] sm:$0xf0] }
  0xbf   :  { %v1380_v45 = vor.u32 %v1606_v38, %v1379_v37  ;;  %v1476_v46 = vor.u32 %v1630_v42, %v1475_v39 }
  0xc1   :  { %1073 = vmatpush.bf16.msra.mxu2 %v1440_v49  ;;  %1087 = vmatpush.bf16.msra.mxu3 %v1536_v50  ;;  %v1463_v49 = vld [vmem:[#allocation7 + $0x248] sm:$0xf]  ;;  %v1627_v50 = vld [vmem:[#allocation7 + $0x250] sm:$0xf0] }
  0xc2   :  { %1047 = vmatpush.bf16.msra.mxu0 %v1224_v52  ;;  %1061 = vmatpush.bf16.msra.mxu1 %v1320_v53  ;;  %v1464_v52 = vor.u32 %v1627_v50, %v1463_v49 }
  0xc5   :  { %1074 = vmatpush.bf16.msra.mxu2 %v1428_v61  ;;  %1088 = vmatpush.bf16.msra.mxu3 %v1524_v62 }
  0xc6   :  { %996 = vmatmul.bf16.vlgmr.msrb.gmra.mxu0 %v1825_v9  ;;  %1010 = vmatmul.bf16.vlgmr.msrb.gmra.mxu1 %v1827_v10 }
  0xc7   :  { %1048 = vmatpush.bf16.msra.mxu0 %v1212_v3  ;;  %1062 = vmatpush.bf16.msra.mxu1 %v1308_v4 }
  0xc9   :  { %1075 = vmatpush.bf16.msra.mxu2 %v1416_v11  ;;  %1089 = vmatpush.bf16.msra.mxu3 %v1512_v12 }
  0xcb   :  { %1049 = vmatpush.bf16.msra.mxu0 %v1200_v17  ;;  %1063 = vmatpush.bf16.msra.mxu1 %v1296_v18 }
  0xcc   :  { %1024 = vmatmul.bf16.vlgmr.msrb.gmra.mxu2 %v1831_v40  ;;  %1038 = vmatmul.bf16.vlgmr.msrb.gmra.mxu3 %v1833_v41 }
  0xcd   :  { %1076 = vmatpush.bf16.msra.mxu2 %v1404_v23  ;;  %1090 = vmatpush.bf16.msra.mxu3 %v1500_v24 }
  0xcf   :  { %1050 = vmatpush.bf16.msra.mxu0 %v1188_v29  ;;  %1064 = vmatpush.bf16.msra.mxu1 %v1284_v30 }
  0xd1   :  { %1077 = vmatpush.bf16.msra.mxu2 %v1392_v35  ;;  %1091 = vmatpush.bf16.msra.mxu3 %v1488_v36 }
  0xd3   :  { %1051 = vmatpush.bf16.msra.mxu0 %v1176_v43  ;;  %1065 = vmatpush.bf16.msra.mxu1 %v1272_v44 }
  0xd5   :  { %1078 = vmatpush.bf16.msra.mxu2 %v1380_v45  ;;  %1092 = vmatpush.bf16.msra.mxu3 %v1476_v46 }
  0xd6   :  { %1052 = vmatmul.bf16.vlgmr.msra.gmra.mxu0 %v1825_v9  ;;  %1066 = vmatmul.bf16.vlgmr.msra.gmra.mxu1 %v1827_v10  ;;  %v412_v9 = vld [vmem:[%s1866_s6] sm:$0x7] }
  0xd7   :  { %v415_v63 = vperm.slane %v412_v9, 1  ;;  %v414_v0 = vperm.slane %v412_v9, 0  ;;  %v416_v8 = vperm.slane %v412_v9, 2 }
  0xd9   :  { %1079 = vmatpush.bf16.msra.mxu2 %v1368_v51  ;;  %1093 = vmatpush.bf16.msra.mxu3 %v1464_v52 }
  0xdc   :  { %1080 = vmatmul.bf16.vlgmr.msra.gmra.mxu2 %v1831_v40  ;;  %1094 = vmatmul.bf16.vlgmr.msra.gmra.mxu3 %v1833_v41 }
 0x132   :  { %v941_v53 = vpop.f32.mrf.mxu0  ;;  %v955_v54 = vpop.f32.mrf.mxu1 }
 0x133   :  { %v942_v3 = vadd.f32 %v941_v53, %v414_v0 }
 0x135   :  { %v956_v6 = vadd.f32 %v955_v54, %v942_v3 }
 0x13a   :  { %v943_v55 = vpop.f32.mrf.mxu0  ;;  %v957_v56 = vpop.f32.mrf.mxu1 }
 0x13b   :  { %v944_v15 = vadd.f32 %v943_v55, %v414_v0 }
 0x13d   :  { %v958_v23 = vadd.f32 %v957_v56, %v944_v15 }
 0x13f   :  { %v969_v57 = vpop.f32.mrf.mxu2  ;;  %v983_v58 = vpop.f32.mrf.mxu3 }
 0x140   :  { %v970_v13 = vadd.f32 %v969_v57, %v956_v6 }
 0x142   :  { %v984_v19 = vadd.f32 %v983_v58, %v970_v13 }
 0x143   :  { %v997_v59 = vpop.f32.mrf.mxu0  ;;  %v1011_v60 = vpop.f32.mrf.mxu1 }
 0x144   :  { %v998_v41 = vadd.f32 %v997_v59, %v415_v63  ;;  %v1100_v30 = vmax.f32 %v984_v19, 0.0 }
 0x146   :  { %v1012_v4 = vadd.f32 %v1011_v60, %v998_v41  ;;  %v1114_v39 = vmul.f32 %v1108_v31, %v1100_v30 }
 0x147   :  { %v971_v61 = vpop.f32.mrf.mxu2  ;;  %v985_v62 = vpop.f32.mrf.mxu3 }
 0x148   :  { %v972_v32 = vadd.f32 %v971_v61, %v958_v23  ;;  %v1129_v61 = vstv %s1868_s8 }
 0x14a   :  { %v986_v42 = vadd.f32 %v985_v62, %v972_v32 }
 0x14b   :  { %v999_v10 = vpop.f32.mrf.mxu0  ;;  %v1013_v2 = vpop.f32.mrf.mxu1 }
 0x14c   :  { %v1000_v14 = vadd.f32 %v999_v10, %v415_v63  ;;  %v1103_v50 = vmax.f32 %v986_v42, 0.0 }
 0x14e   :  { %v1014_v21 = vadd.f32 %v1013_v2, %v1000_v14  ;;  %v1117_v56 = vmul.f32 %v1108_v31, %v1103_v50 }
 0x14f   :  { %v1025_v40 = vpop.f32.mrf.mxu2  ;;  %v1039_v1 = vpop.f32.mrf.mxu3 }
 0x150   :  { %v1026_v7 = vadd.f32 %v1025_v40, %v1012_v4 }
 0x152   :  { %v1040_v16 = vadd.f32 %v1039_v1, %v1026_v7 }
 0x153   :  { %v1053_v5 = vpop.f32.mrf.mxu0  ;;  %v1067_v18 = vpop.f32.mrf.mxu1 }
 0x154   :  { %v1054_v17 = vadd.f32 %v1053_v5, %v416_v8  ;;  %v1101_v24 = vmax.f32 %v1040_v16, 0.0 }
 0x156   :  { %v1068_v25 = vadd.f32 %v1067_v18, %v1054_v17  ;;  %v1115_v35 = vmul.f32 %v1109_v22, %v1101_v24 }
 0x157   :  { %v1027_v11 = vpop.f32.mrf.mxu2  ;;  %v1041_v12 = vpop.f32.mrf.mxu3 }
 0x158   :  { %v1028_v26 = vadd.f32 %v1027_v11, %v1014_v21  ;;  %v1120_v48 = vadd.f32 %v1115_v35, %v1114_v39 }
 0x15a   :  { %v1042_v36 = vadd.f32 %v1041_v12, %v1028_v26 }
 0x15b   :  { %v1055_v27 = vpop.f32.mrf.mxu0  ;;  %v1069_v44 = vpop.f32.mrf.mxu1 }
 0x15c   :  { %v1056_v37 = vadd.f32 %v1055_v27, %v416_v8  ;;  %v1104_v45 = vmax.f32 %v1042_v36, 0.0 }
 0x15e   :  { %v1070_v46 = vadd.f32 %v1069_v44, %v1056_v37  ;;  %v1118_v54 = vmul.f32 %v1109_v22, %v1104_v45 }
 0x15f   :  { %v1081_v28 = vpop.f32.mrf.mxu2  ;;  %v1095_v29 = vpop.f32.mrf.mxu3 }
 0x160   :  { %v1082_v33 = vadd.f32 %v1081_v28, %v1068_v25  ;;  %v1124_v59 = vadd.f32 %v1118_v54, %v1117_v56 }
 0x162   :  { %v1096_v38 = vadd.f32 %v1095_v29, %v1082_v33 }
 0x164   :  { %v1102_v43 = vmax.f32 %v1096_v38, 0.0 }
 0x166   :  { %v1116_v47 = vmul.f32 %v1110_v34, %v1102_v43 }
 0x167   :  { %v1083_v49 = vpop.f32.mrf.mxu2  ;;  %v1097_v53 = vpop.f32.mrf.mxu3 }
 0x168   :  { %v1084_v51 = vadd.f32 %v1083_v49, %v1070_v46  ;;  %v1121_v52 = vadd.f32 %v1120_v48, %v1116_v47 }
 0x16a   :  { %v1098_v55 = vadd.f32 %v1097_v53, %v1084_v51  ;;  %1122 = vadd.xlane.f32.xlu0 %v1121_v52 }
 0x16c   :  { %v1105_v57 = vmax.f32 %v1098_v55, 0.0 }
 0x16e   :  { %v1119_v58 = vmul.f32 %v1110_v34, %v1105_v57 }
 0x170   :  { %v1125_v60 = vadd.f32 %v1124_v59, %v1119_v58 }
 0x172   :  { %1126 = vadd.xlane.f32.xlu0 %v1125_v60 }
 0x1dd   :  { %v1123_v62 = vpop.xlane.xlu0 %1122 }
 0x1de   :  { %v1130_v9 = vadd.f32 %v1129_v61, %v1123_v62 }
 0x1e0   :  { %1133 = vst.msk [vmem:[%s1869_s9] sm:$0xff] %vm1132_vm3, %v1130_v9 }
 0x1e5   :  { %v1127_v10 = vpop.xlane.xlu0 %1126 }
 0x1e6   :  { %v1131_v63 = vadd.f32 %v1129_v61, %v1127_v10 }
 0x1e8   :  { %1134 = vst.msk [vmem:[%s1869_s9 + $0x8] sm:$0xff] %vm1132_vm3, %v1131_v63 }
 0x1e9   :  { %1139 = vsyncpa [#allocation4], 1 }
 0x1ea   :  { %1140 = vsyncpa [#allocation6], 1 }

</bundles_post_ra>
